<compile_context>
chip_gen: v6e
topology: v6e:2x2x1
jax: 0.10.0
libtpu: 0.0.40
codegen_flags: <defaults>
</compile_context>

<pallas_src>
import functools
import math

import jax
import jax.numpy as jnp
from jax.experimental import pallas as pl
from jax.experimental.pallas import tpu as pltpu


# --------------------------------------------------------------------------
# Helpers
# --------------------------------------------------------------------------
def _nbytes(shape, dtype):
    return math.prod(shape) * jnp.dtype(dtype).itemsize


@functools.lru_cache(maxsize=1)
def _vmem_cap_bytes():
    try:
        return int(pltpu.get_tpu_info().vmem_capacity_bytes)
    except Exception:
        return 64 << 20  # conservative default (v7x per-TensorCore VMEM)


def _vmem_limit_bytes(block_bytes):
    """Scoped-VMEM limit from actual operand footprints (double-buffered) +
    slack, capped to a fraction of the detected per-core VMEM."""
    need = 2 * block_bytes + (4 << 20)
    cap = max(32 << 20, (_vmem_cap_bytes() * 3) // 4)
    return int(min(max(need, 32 << 20), cap))


def _choose_block_b(B, align):
    """Largest divisor of B that is a multiple of `align`, capped at 256 rows,
    preferring >= 2 grid tiles (software pipelining + v7x dual-TC sharding).
    Falls back to the full batch (single tile) when B is ragged."""
    if B % align != 0:
        return B
    single_tile = None
    cand = min(256, B)
    cand -= cand % align
    while cand >= align:
        if B % cand == 0:
            if B // cand >= 2:
                return cand
            if single_tile is None:
                single_tile = cand
        cand -= align
    return single_tile if single_tile is not None else B


def _slstm_pointwise(gates, c_prev, n_prev, m_prev, H, exact_div):
    """Shared sLSTM elementwise tail (all f32).

    gates layout (lane-dense): [z | i | f | o], each H wide.
    """
    z_t = jnp.tanh(gates[:, 0 * H:1 * H])
    i_tilda = gates[:, 1 * H:2 * H]
    f_tilda = gates[:, 2 * H:3 * H]
    o_t = jax.nn.sigmoid(gates[:, 3 * H:4 * H])

    # Stable log(sigmoid(f)).  f_t = exp(log_f) reuses it, saving a separate
    # sigmoid on the single EUP slot.  (jnp.log(1+x) kept instead of log1p for
    # Mosaic lowering coverage; x = exp(-|f|) <= 1 so precision loss is nil.)
    log_f = jnp.minimum(f_tilda, 0.0) - jnp.log(1.0 + jnp.exp(-jnp.abs(f_tilda)))
    f_t = jnp.exp(log_f)

    # log(exp(i_tilda)) == i_tilda  (no exp/log round trip, no overflow).
    m_t = jnp.maximum(log_f + m_prev, i_tilda)
    i_prime = jnp.exp(i_tilda - m_t)

    c_t = f_t * c_prev + i_prime * z_t
    n_t = f_t * n_prev + i_prime
    if exact_div:
        h_t = o_t * (c_t / n_t)                                   # f32 path
    else:
        h_t = o_t * (c_t * pl.reciprocal(n_t, approx=True))       # bf16 path
    return h_t, c_t, n_t, m_t


# --------------------------------------------------------------------------
# Kernel 1: single sLSTM step (packed state, aliased in place)
# --------------------------------------------------------------------------
def slstm_step_kernel(x_ref, state_ref, wx_ref, wh_ref, b_ref, out_ref):
    """x_ref:(tb,I) [weight dtype], state_ref:(tb,4H) f32 packed [h|c|n|m],
    wx_ref:(I,4H), wh_ref:(H,4H), b_ref:(1,4H) f32, out_ref:(tb,4H) f32."""
    H = wh_ref.shape[0]
    mxu_dtype = wx_ref.dtype

    h_prev = state_ref[:, 0 * H:1 * H]
    c_prev = state_ref[:, 1 * H:2 * H]
    n_prev = state_ref[:, 2 * H:3 * H]
    m_prev = state_ref[:, 3 * H:4 * H]

    # One lane-dense (tb, 4H) gate pre-activation: two MXU pushes with N=4H.
    gates = (
        jnp.dot(x_ref[...], wx_ref[...], preferred_element_type=jnp.float32)
        + jnp.dot(h_prev.astype(mxu_dtype), wh_ref[...],
                  preferred_element_type=jnp.float32)
        + b_ref[...]
    )

    h_t, c_t, n_t, m_t = _slstm_pointwise(
        gates, c_prev, n_prev, m_prev, H,
        exact_div=(mxu_dtype == jnp.float32))

    # Four static lane-dense slice stores (no concat / XLU shuffle).
    out_ref[:, 0 * H:1 * H] = h_t
    out_ref[:, 1 * H:2 * H] = c_t
    out_ref[:, 2 * H:3 * H] = n_t
    out_ref[:, 3 * H:4 * H] = m_t


def slstm_cell_forward_packed(x, state_packed, Wx, Wh, bias):
    """One step on packed state. x:(B,I), state_packed:(B,4H) f32 [h|c|n|m],
    Wx:(I,4H), Wh:(H,4H) (f32 or bf16), bias:(4H,).  Returns (B,4H) f32."""
    B, I = x.shape
    fourH = state_packed.shape[1]
    H = fourH // 4
    mxu_dtype = Wx.dtype
    x = x.astype(mxu_dtype)            # bf16 at the boundary on the bf16 path
    bias2d = bias.reshape(1, fourH).astype(jnp.float32)

    align = 16 if mxu_dtype == jnp.bfloat16 else 8
    block_b = _choose_block_b(B, align)
    grid = (pl.cdiv(B, block_b),)

    blk_bytes = (
        _nbytes((block_b, I), mxu_dtype)
        + _nbytes((block_b, fourH), jnp.float32)
        + _nbytes((I, fourH), mxu_dtype)
        + _nbytes((H, fourH), mxu_dtype)
        + _nbytes((1, fourH), jnp.float32)
        + _nbytes((block_b, fourH), jnp.float32)
    )

    return pl.pallas_call(
        slstm_step_kernel,
        out_shape=jax.ShapeDtypeStruct((B, fourH), jnp.float32),
        grid=grid,
        in_specs=[
            pl.BlockSpec((block_b, I), lambda i: (i, 0)),       # x
            pl.BlockSpec((block_b, fourH), lambda i: (i, 0)),   # packed state
            pl.BlockSpec((I, fourH), lambda i: (0, 0)),         # Wx (resident)
            pl.BlockSpec((H, fourH), lambda i: (0, 0)),         # Wh (resident)
            pl.BlockSpec((1, fourH), lambda i: (0, 0)),         # bias
        ],
        out_specs=pl.BlockSpec((block_b, fourH), lambda i: (i, 0)),
        input_output_aliases={1: 0},     # packed state buffer reused in place
        compiler_params=pltpu.CompilerParams(
            dimension_semantics=("parallel",),
            vmem_limit_bytes=_vmem_limit_bytes(blk_bytes),
        ),
    )(x, state_packed, Wx, Wh, bias2d)


@jax.jit
def slstm_cell_forward(x, internal_state, Wx, Wh, bias):
    """Matches sLSTMCell.forward (tuple-state API). Returns (h_t, (h,c,n,m))."""
    h, c, n, m = internal_state
    H = h.shape[1]
    state_packed = jnp.concatenate([h, c, n, m], axis=1)
    out = slstm_cell_forward_packed(x, state_packed, Wx, Wh, bias)
    h_t = out[:, 0 * H:1 * H]
    c_t = out[:, 1 * H:2 * H]
    n_t = out[:, 2 * H:3 * H]
    m_t = out[:, 3 * H:4 * H]
    return h_t, (h_t, c_t, n_t, m_t)


# --------------------------------------------------------------------------
# Kernel 2: fused multi-timestep sequence (weights resident across all steps)
# --------------------------------------------------------------------------
def slstm_seq_kernel(x_ref, state0_ref, wx_ref, wh_ref, b_ref,
                     h_out_ref, state_out_ref, carry_ref):
    """Grid = (batch_tiles, T); t = program_id(1) is innermost ("arbitrary").

    x_ref:        (1, tb, I)  input at timestep t (weight dtype)
    state0_ref:   (tb, 4H)    initial packed state (resident per batch tile)
    wx_ref/wh_ref/b_ref:      weights/bias, resident across the whole grid
    h_out_ref:    (1, tb, H)  per-step hidden output
    state_out_ref:(tb, 4H)    final packed state (written at t == T-1)
    carry_ref:    (tb, 4H)    VMEM scratch: state carried across timesteps
    """
    H = wh_ref.shape[0]
    mxu_dtype = wx_ref.dtype
    t = pl.program_id(1)

    @pl.when(t == 0)
    def _():
        carry_ref[...] = state0_ref[...]

    h_prev = carry_ref[:, 0 * H:1 * H]
    c_prev = carry_ref[:, 1 * H:2 * H]
    n_prev = carry_ref[:, 2 * H:3 * H]
    m_prev = carry_ref[:, 3 * H:4 * H]

    gates = (
        jnp.dot(x_ref[0], wx_ref[...], preferred_element_type=jnp.float32)
        + jnp.dot(h_prev.astype(mxu_dtype), wh_ref[...],
                  preferred_element_type=jnp.float32)
        + b_ref[...]
    )

    h_t, c_t, n_t, m_t = _slstm_pointwise(
        gates, c_prev, n_prev, m_prev, H,
        exact_div=(mxu_dtype == jnp.float32))

    carry_ref[:, 0 * H:1 * H] = h_t
    carry_ref[:, 1 * H:2 * H] = c_t
    carry_ref[:, 2 * H:3 * H] = n_t
    carry_ref[:, 3 * H:4 * H] = m_t
    h_out_ref[0] = h_t

    @pl.when(t == pl.num_programs(1) - 1)
    def _():
        state_out_ref[...] = carry_ref[...]


def slstm_sequence_forward_packed(x_seq, state_packed, Wx, Wh, bias):
    """Fused T-step sLSTM. x_seq:(T,B,I), state_packed:(B,4H) f32.
    Returns (h_seq:(T,B,H) f32, final packed state:(B,4H) f32)."""
    T, B, I = x_seq.shape
    fourH = state_packed.shape[1]
    H = fourH // 4
    mxu_dtype = Wx.dtype
    x_seq = x_seq.astype(mxu_dtype)
    bias2d = bias.reshape(1, fourH).astype(jnp.float32)

    align = 16 if mxu_dtype == jnp.bfloat16 else 8
    block_b = _choose_block_b(B, align)
    grid = (pl.cdiv(B, block_b), T)   # time innermost: weights stay resident

    blk_bytes = (
        _nbytes((1, block_b, I), mxu_dtype)
        + _nbytes((block_b, fourH), jnp.float32)     # state0
        + _nbytes((I, fourH), mxu_dtype)
        + _nbytes((H, fourH), mxu_dtype)
        + _nbytes((1, fourH), jnp.float32)
        + _nbytes((1, block_b, H), jnp.float32)      # h_out tile
        + _nbytes((block_b, fourH), jnp.float32)     # state_out tile
        + _nbytes((block_b, fourH), jnp.float32)     # carry scratch
    )

    h_seq, state_out = pl.pallas_call(
        slstm_seq_kernel,
        out_shape=(jax.ShapeDtypeStruct((T, B, H), jnp.float32),
                   jax.ShapeDtypeStruct((B, fourH), jnp.float32)),
        grid=grid,
        in_specs=[
            pl.BlockSpec((1, block_b, I), lambda i, t: (t, i, 0)),   # x_t
            pl.BlockSpec((block_b, fourH), lambda i, t: (i, 0)),     # state0
            pl.BlockSpec((I, fourH), lambda i, t: (0, 0)),           # Wx
            pl.BlockSpec((H, fourH), lambda i, t: (0, 0)),           # Wh
            pl.BlockSpec((1, fourH), lambda i, t: (0, 0)),           # bias
        ],
        out_specs=(
            pl.BlockSpec((1, block_b, H), lambda i, t: (t, i, 0)),   # h per step
            pl.BlockSpec((block_b, fourH), lambda i, t: (i, 0)),     # final state
        ),
        scratch_shapes=[pltpu.VMEM((block_b, fourH), jnp.float32)],  # carry
        compiler_params=pltpu.CompilerParams(
            dimension_semantics=("parallel", "arbitrary"),
            vmem_limit_bytes=_vmem_limit_bytes(blk_bytes),
        ),
    )(x_seq, state_packed, Wx, Wh, bias2d)
    return h_seq, state_out


@jax.jit
def slstm_sequence_forward(x_seq, internal_state, Wx, Wh, bias):
    """Tuple-state API for the fused sequence kernel.
    Returns (h_seq:(T,B,H), (h_T, c_T, n_T, m_T))."""
    h, c, n, m = internal_state
    H = h.shape[1]
    state_packed = jnp.concatenate([h, c, n, m], axis=1)
    h_seq, out = slstm_sequence_forward_packed(x_seq, state_packed, Wx, Wh, bias)
    return h_seq, (out[:, 0 * H:1 * H], out[:, 1 * H:2 * H],
                   out[:, 2 * H:3 * H], out[:, 3 * H:4 * H])


# --------------------------------------------------------------------------
# Pure-JAX references (mirror the PyTorch module exactly, f32)
# --------------------------------------------------------------------------
def reference_forward(x, internal_state, W, bias):
    h, c, n, m = internal_state
    H = h.shape[1]
    combined = jnp.concatenate([x, h], axis=1)
    gates = jnp.dot(combined, W, precision=jax.lax.Precision.HIGHEST) + bias
    z_tilda = gates[:, :H]
    i_tilda = gates[:, H:2 * H]
    f_tilda = gates[:, 2 * H:3 * H]
    o_tilda = gates[:, 3 * H:]
    z_t = jnp.tanh(z_tilda)
    i_t = jnp.exp(i_tilda)
    f_t = jax.nn.sigmoid(f_tilda)
    o_t = jax.nn.sigmoid(o_tilda)
    m_t = jnp.maximum(jnp.log(f_t) + m, jnp.log(i_t))
    i_prime = jnp.exp(i_tilda - m_t)
    c_t = f_t * c + i_prime * z_t
    n_t = f_t * n + i_prime
    h_t = o_t * (c_t / n_t)
    return h_t, (h_t, c_t, n_t, m_t)


def reference_sequence(x_seq, internal_state, W, bias):
    state = internal_state
    hs = []
    for t in range(x_seq.shape[0]):
        h_t, state = reference_forward(x_seq[t], state, W, bias)
        hs.append(h_t)
    return jnp.stack(hs, axis=0), state


# --------------------------------------------------------------------------
if __name__ == "__main__":
    batch_size = 32
    input_size = 64
    hidden_size = 128      # lane-aligned: gate slices / stores are vreg-dense
    seq_len = 8

    key = jax.random.PRNGKey(0)
    k_w, k_x, k_xs = jax.random.split(key, 3)

    # Deterministic xavier_uniform init for W: shape (I+H, 4H)
    D = input_size + hidden_size
    bound = jnp.sqrt(6.0 / (D + 4 * hidden_size))
    W = jax.random.uniform(k_w, (D, 4 * hidden_size),
                           minval=-bound, maxval=bound, dtype=jnp.float32)
    bias = jnp.zeros((4 * hidden_size,), dtype=jnp.float32)

    # One-time static row-split of W (done outside the recurrent step).
    Wx = W[:input_size]          # (I, 4H)
    Wh = W[input_size:]          # (H, 4H)

    x = jax.random.normal(k_x, (batch_size, input_size), dtype=jnp.float32)
    x_seq = jax.random.normal(k_xs, (seq_len, batch_size, input_size),
                              dtype=jnp.float32)

    zeros = jnp.zeros((batch_size, hidden_size), dtype=jnp.float32)
    state0 = (zeros, zeros, zeros, zeros)

    # ---- single step, f32 weights ---------------------------------------
    h_ref, (hr, cr, nr, mr) = reference_forward(x, state0, W, bias)
    h_t, (ho, co, no, mo) = slstm_cell_forward(x, state0, Wx, Wh, bias)
    jax.block_until_ready(h_t)
    assert jnp.allclose(h_t, h_ref, atol=1e-5, rtol=1e-5)
    assert jnp.allclose(co, cr, atol=1e-5, rtol=1e-5)
    assert jnp.allclose(no, nr, atol=1e-5, rtol=1e-5)
    assert jnp.allclose(mo, mr, atol=1e-5, rtol=1e-5)

    # ---- single step, bf16 weights (bf16 MXU, f32 accumulate + tail) ----
    h_bf, (hb, cb, nb, mb) = slstm_cell_forward(
        x, state0, Wx.astype(jnp.bfloat16), Wh.astype(jnp.bfloat16), bias)
    jax.block_until_ready(h_bf)
    assert jnp.allclose(h_bf, h_ref, atol=3e-2, rtol=3e-2)
    assert jnp.allclose(cb, cr, atol=3e-2, rtol=3e-2)

    # ---- fused sequence, f32 weights -------------------------------------
    h_seq_ref, (hr2, cr2, nr2, mr2) = reference_sequence(x_seq, state0, W, bias)
    h_seq, (hf, cf, nf, mf) = slstm_sequence_forward(x_seq, state0, Wx, Wh, bias)
    jax.block_until_ready(h_seq)
    assert jnp.allclose(h_seq, h_seq_ref, atol=1e-4, rtol=1e-4)
    assert jnp.allclose(hf, hr2, atol=1e-4, rtol=1e-4)
    assert jnp.allclose(cf, cr2, atol=1e-4, rtol=1e-4)
    assert jnp.allclose(nf, nr2, atol=1e-4, rtol=1e-4)
    assert jnp.allclose(mf, mr2, atol=1e-4, rtol=1e-4)

    # ---- fused sequence, bf16 weights (per-step h-cast drift tolerated) --
    h_seq_bf, _ = slstm_sequence_forward(
        x_seq, state0, Wx.astype(jnp.bfloat16), Wh.astype(jnp.bfloat16), bias)
    jax.block_until_ready(h_seq_bf)
    assert jnp.allclose(h_seq_bf, h_seq_ref, atol=5e-2, rtol=5e-2)

    print("KERNEL_OK")
</pallas_src>

<mosaic_0001>
module attributes {stable_mosaic.version = 11 : i64} {
  func.func @slstm_step_kernel(%arg0: i32, %arg1: memref<16x64xf32, #tpu.memory_space<vmem>>, %arg2: memref<16x512xf32, #tpu.memory_space<vmem>>, %arg3: memref<64x512xf32, #tpu.memory_space<vmem>>, %arg4: memref<128x512xf32, #tpu.memory_space<vmem>>, %arg5: memref<1x512xf32, #tpu.memory_space<vmem>>, %arg6: memref<16x512xf32, #tpu.memory_space<vmem>>) attributes {dimension_semantics = [#tpu.dimension_semantics<parallel>], iteration_bounds = array<i64: 2>, scalar_prefetch = 0 : i64, scratch_operands = 0 : i64, tpu.core_type = #tpu.core_type<tc>, window_params = [{transform_indices = @transform_0, window_bounds = array<i64: 16, 64>}, {transform_indices = @transform_1, window_bounds = array<i64: 16, 512>}, {pipeline_mode = #tpu.pipeline_mode<synchronous>, transform_indices = @transform_2, window_bounds = array<i64: 64, 512>}, {pipeline_mode = #tpu.pipeline_mode<synchronous>, transform_indices = @transform_3, window_bounds = array<i64: 128, 512>}, {pipeline_mode = #tpu.pipeline_mode<synchronous>, transform_indices = @transform_4, window_bounds = array<i64: 1, 512>}, {transform_indices = @transform_5, window_bounds = array<i64: 16, 512>}]} {
    %c0 = arith.constant 0 : index
    %c0_0 = arith.constant 0 : index
    %0 = vector.load %arg2[%c0, %c0_0] : memref<16x512xf32, #tpu.memory_space<vmem>>, vector<16x128xf32>
    %c0_1 = arith.constant 0 : index
    %c128 = arith.constant 128 : index
    %1 = vector.load %arg2[%c0_1, %c128] : memref<16x512xf32, #tpu.memory_space<vmem>>, vector<16x128xf32>
    %c0_2 = arith.constant 0 : index
    %c256 = arith.constant 256 : index
    %2 = vector.load %arg2[%c0_2, %c256] : memref<16x512xf32, #tpu.memory_space<vmem>>, vector<16x128xf32>
    %c0_3 = arith.constant 0 : index
    %c384 = arith.constant 384 : index
    %3 = vector.load %arg2[%c0_3, %c384] : memref<16x512xf32, #tpu.memory_space<vmem>>, vector<16x128xf32>
    %c0_4 = arith.constant 0 : index
    %c0_5 = arith.constant 0 : index
    %4 = vector.load %arg1[%c0_4, %c0_5] : memref<16x64xf32, #tpu.memory_space<vmem>>, vector<16x64xf32>
    %c0_6 = arith.constant 0 : index
    %c0_7 = arith.constant 0 : index
    %5 = vector.load %arg3[%c0_6, %c0_7] : memref<64x512xf32, #tpu.memory_space<vmem>>, vector<64x512xf32>
    %cst = arith.constant dense<0.000000e+00> : vector<16x512xf32>
    %6 = tpu.matmul %4, %5, %cst {dimension_numbers = #tpu.dot_dimension_numbers<[1], [0], [0], [1], [0, 0, 1, 1], [], []>} : vector<16x64xf32>, vector<64x512xf32>, vector<16x512xf32> -> vector<16x512xf32>
    %c0_8 = arith.constant 0 : index
    %c0_9 = arith.constant 0 : index
    %7 = vector.load %arg4[%c0_8, %c0_9] : memref<128x512xf32, #tpu.memory_space<vmem>>, vector<128x512xf32>
    %cst_10 = arith.constant dense<0.000000e+00> : vector<16x512xf32>
    %8 = tpu.matmul %0, %7, %cst_10 {dimension_numbers = #tpu.dot_dimension_numbers<[1], [0], [0], [1], [0, 0, 1, 1], [], []>} : vector<16x128xf32>, vector<128x512xf32>, vector<16x512xf32> -> vector<16x512xf32>
    %9 = arith.addf %6, %8 : vector<16x512xf32>
    %c0_11 = arith.constant 0 : index
    %c0_12 = arith.constant 0 : index
    %10 = vector.load %arg5[%c0_11, %c0_12] : memref<1x512xf32, #tpu.memory_space<vmem>>, vector<1x512xf32>
    %11 = vector.broadcast %10 : vector<1x512xf32> to vector<16x512xf32>
    %12 = arith.addf %9, %11 : vector<16x512xf32>
    %13 = vector.extract_strided_slice %12 {offsets = [0, 0], sizes = [16, 128], strides = [1, 1]} : vector<16x512xf32> to vector<16x128xf32>
    %14 = math.tanh %13 : vector<16x128xf32>
    %15 = vector.extract_strided_slice %12 {offsets = [0, 128], sizes = [16, 128], strides = [1, 1]} : vector<16x512xf32> to vector<16x128xf32>
    %16 = vector.extract_strided_slice %12 {offsets = [0, 256], sizes = [16, 128], strides = [1, 1]} : vector<16x512xf32> to vector<16x128xf32>
    %17 = vector.extract_strided_slice %12 {offsets = [0, 384], sizes = [16, 128], strides = [1, 1]} : vector<16x512xf32> to vector<16x128xf32>
    %18 = arith.negf %17 : vector<16x128xf32>
    %19 = math.exp %18 : vector<16x128xf32>
    %cst_13 = arith.constant 1.000000e+00 : f32
    %20 = vector.broadcast %cst_13 : f32 to vector<16x128xf32>
    %21 = arith.addf %20, %19 : vector<16x128xf32>
    %22 = arith.divf %20, %21 : vector<16x128xf32>
    %cst_14 = arith.constant 0.000000e+00 : f32
    %23 = vector.broadcast %cst_14 : f32 to vector<16x128xf32>
    %24 = arith.minimumf %16, %23 : vector<16x128xf32>
    %25 = math.absf %16 : vector<16x128xf32>
    %cst_15 = arith.constant 0.000000e+00 : f32
    %26 = vector.broadcast %cst_15 : f32 to vector<16x128xf32>
    %27 = arith.subf %26, %25 : vector<16x128xf32>
    %28 = math.exp %27 : vector<16x128xf32>
    %cst_16 = arith.constant 1.000000e+00 : f32
    %29 = vector.broadcast %cst_16 : f32 to vector<16x128xf32>
    %30 = arith.addf %29, %28 : vector<16x128xf32>
    %31 = math.log %30 : vector<16x128xf32>
    %32 = arith.subf %24, %31 : vector<16x128xf32>
    %33 = math.exp %32 : vector<16x128xf32>
    %34 = arith.addf %32, %3 : vector<16x128xf32>
    %35 = arith.maximumf %34, %15 : vector<16x128xf32>
    %36 = arith.subf %15, %35 : vector<16x128xf32>
    %37 = math.exp %36 : vector<16x128xf32>
    %38 = arith.mulf %33, %1 : vector<16x128xf32>
    %39 = arith.mulf %37, %14 : vector<16x128xf32>
    %40 = arith.addf %38, %39 : vector<16x128xf32>
    %41 = arith.mulf %33, %2 : vector<16x128xf32>
    %42 = arith.addf %41, %37 : vector<16x128xf32>
    %43 = arith.divf %40, %42 : vector<16x128xf32>
    %44 = arith.mulf %22, %43 : vector<16x128xf32>
    %c0_17 = arith.constant 0 : index
    %c0_18 = arith.constant 0 : index
    %45 = vector.load %arg6[%c0_17, %c0_18] : memref<16x512xf32, #tpu.memory_space<vmem>>, vector<16x128xf32>
    tpu.vector_store %arg6[%c0_17, %c0_18], %44 {strides = array<i32>} : memref<16x512xf32, #tpu.memory_space<vmem>>, vector<16x128xf32>,
    %c0_19 = arith.constant 0 : index
    %c128_20 = arith.constant 128 : index
    %46 = vector.load %arg6[%c0_19, %c128_20] : memref<16x512xf32, #tpu.memory_space<vmem>>, vector<16x128xf32>
    tpu.vector_store %arg6[%c0_19, %c128_20], %40 {strides = array<i32>} : memref<16x512xf32, #tpu.memory_space<vmem>>, vector<16x128xf32>,
    %c0_21 = arith.constant 0 : index
    %c256_22 = arith.constant 256 : index
    %47 = vector.load %arg6[%c0_21, %c256_22] : memref<16x512xf32, #tpu.memory_space<vmem>>, vector<16x128xf32>
    tpu.vector_store %arg6[%c0_21, %c256_22], %42 {strides = array<i32>} : memref<16x512xf32, #tpu.memory_space<vmem>>, vector<16x128xf32>,
    %c0_23 = arith.constant 0 : index
    %c384_24 = arith.constant 384 : index
    %48 = vector.load %arg6[%c0_23, %c384_24] : memref<16x512xf32, #tpu.memory_space<vmem>>, vector<16x128xf32>
    tpu.vector_store %arg6[%c0_23, %c384_24], %35 {strides = array<i32>} : memref<16x512xf32, #tpu.memory_space<vmem>>, vector<16x128xf32>,
    return
  }
  func.func @transform_0(%arg0: i32) -> (i32, i32) {
    %c0_i32 = arith.constant 0 : i32
    %c0_i32_0 = arith.constant 0 : i32
    return %arg0, %c0_i32 : i32, i32
  }
  func.func @transform_1(%arg0: i32) -> (i32, i32) {
    %c0_i32 = arith.constant 0 : i32
    %c0_i32_0 = arith.constant 0 : i32
    return %arg0, %c0_i32 : i32, i32
  }
  func.func @transform_2(%arg0: i32) -> (i32, i32) {
    %c0_i32 = arith.constant 0 : i32
    %c0_i32_0 = arith.constant 0 : i32
    %c0_i32_1 = arith.constant 0 : i32
    return %c0_i32, %c0_i32_0 : i32, i32
  }
  func.func @transform_3(%arg0: i32) -> (i32, i32) {
    %c0_i32 = arith.constant 0 : i32
    %c0_i32_0 = arith.constant 0 : i32
    %c0_i32_1 = arith.constant 0 : i32
    return %c0_i32, %c0_i32_0 : i32, i32
  }
  func.func @transform_4(%arg0: i32) -> (i32, i32) {
    %c0_i32 = arith.constant 0 : i32
    %c0_i32_0 = arith.constant 0 : i32
    %c0_i32_1 = arith.constant 0 : i32
    return %c0_i32, %c0_i32_0 : i32, i32
  }
  func.func @transform_5(%arg0: i32) -> (i32, i32) {
    %c0_i32 = arith.constant 0 : i32
    %c0_i32_0 = arith.constant 0 : i32
    return %arg0, %c0_i32 : i32, i32
  }
}

</mosaic_0001>

<bundles_post_ra>
// kernel: slstm_cell_forward.1
= control target key start
LH: loop header
LB: loop body
LE: loop exit
PB: predicated region body
PF: predicated region fallthrough
CT: control target
= control target key end

     0   :  { %10 = vsyncpa [#allocation3], 0  ;;  %s1429_s0 = inlined_call_operand.hbm [shape: f32[32,64], index: 0, kind: input, shape index: {}]   ;;  %s1430_s1 = inlined_call_operand.vmem [shape: f32[32,512], index: 1, kind: input, shape index: {}, may-alias: {1,5}]   ;;  %s1431_s2 = inlined_call_operand.vmem [shape: f32[64,512], index: 2, kind: input, shape index: {}]   ;;  %s1432_s3 = inlined_call_operand.hbm [shape: f32[128,512], index: 3, kind: input, shape index: {}]   ;;  %s1433_s4 = inlined_call_operand.vmem [shape: f32[1,512], index: 4, kind: input, shape index: {}]   ;;  %s1434_s5 = inlined_call_operand.vmem [shape: f32[32,512], index: 5, kind: output, shape index: {}, may-alias: {1,5}]  }
   0x1   :  { %12 = vsyncpa [#allocation3 + $0x1], 0 }
   0x2   :  { %13 = vsyncpa [#allocation5], 0  ;;  %s1147_s18 = smov 0   ;;  %s1149_s19 = smov 0  }
   0x3   :  { %s1151_s20 = smov 0   ;;  %s1153_s21 = smov 0  }
   0x4 LB: > { %s901_s22 = sadd.s32 4294967295, %s1108_s21   ;;  %p39_p0 = scmp.ne.s32.totalorder %s1100_s19, %s1096_s18  ;;  %s1108_s21 = sphi %s1153_s21, %s1450_s21   ;;  %s1104_s20 = sphi %s1151_s20, %s1449_s20   ;;  %s1100_s19 = sphi %s1149_s19, %s1448_s19   ;;  %s1096_s18 = sphi %s1147_s18, %s1447_s18  }
   0x5   : > { %p1169_p1 = scmp.eq.s32.totalorder %s901_s22, 0  ;;  %p903_p2 = scmp.ge.s32.totalorder %s1108_s21, 1 }
   0x6   : > { %p165_p3 = scmp.lt.s32.totalorder %s1108_s21, 3  ;;  %s1110_s26 = smov [#allocation4]  }
   0x7   : > { %s1439_s23 = scalar_select %p1169_p1, 1, 0 }
   0x8   : > { %p1177_p4 = por %p1169_p1, %p39_p0  ;;  %p1181_p5 = pnand %p903_p2, %p165_p3 }
   0x9   : > { %s180_s27 = sshll.u32 %s1110_s26, 4  ;;  %s1194_s29 = sadd.s32 1, %s1108_s21   ;;  %s181_s27 = int_to_ptr.vmem [resolvable:$true] %s180_s27 }
   0xa   : > { %s1440_s24 = scalar_select %p1177_p4, 1, 0 }
   0xb   : > { %s1441_s25 = scalar_select %p1181_p5, 1, 0 }
   0xc   : > { %p935_p6 = pneg %p1181_p5  ;;  %s26_s30 = sadd.s32 1, %s1104_s20 }
   0xd   : > { %s23_s6 = ssub.s32 %s1108_s21, %s1194_s29  ;;  %s1027_s7 = scalar_lea.vmem %s181_s27, 8192 }
   0xe   : > { %p1189_p7 = pnand %p935_p6, %p1169_p1  ;;  %p1028_p9 = scmp.ne.s32.totalorder %s181_s27, %s1027_s7 }
   0xf   : > { %p1035_p12 = scmp.lt.s32.totalorder %s181_s27, %s181_s27  ;;  %p1036_p13 = scmp.lt.s32.totalorder %s1027_s7, %s1027_s7 }
  0x10   : > { %p1018_p8 = pneg %p1189_p7 }
  0x11   : > { %p1037_p0 = por %p1036_p13, %p1035_p12 }
  0x12   : > { %p1030_p10 = pnand %p1028_p9, %p1018_p8 }
  0x14   : > { %p1031_p11 = pneg %p1030_p10 }
  0x16   : > { %p1038_p2 = pnand %p1037_p0, %p1031_p11 }
  0x18   : > { %1041 = shalt.err (!%p1038_p2)
}
  0x19   : > { %s1111_s8 = smov 512   ;;  %s1112_s9 = smov 32  }
  0x1a   : > { %938 = dma.hbm_to_vmem [thread:$0]  (!%p1189_p7), %s1432_s3, 8192, %s181_s27, [#allocation5], %s1111_s8, %s1111_s8, %s1112_s9  }
  0x1b   : > { %p24_p3 = scmp.eq.s32.totalorder %s23_s6, 0  ;;  %p33_p6 = scmp.ne.s32.totalorder %s1104_s20, %s1100_s19 }
  0x1c   : > { %p34_p8 = scmp.eq.s32.totalorder %s1108_s21, 0  ;;  %p944_p9 = scmp.lt.s32.totalorder %s1108_s21, 2 }
  0x1d   : > { %s1211_s12 = scalar_select %p24_p3, %s1104_s20, %s26_s30  }
  0x1e   : > { %p35_p10 = por %p34_p8, %p33_p6  ;;  %s197_s13 = sand.u32 1, %s1104_s20  }
  0x1f   : > { %s906_s14 = sshll.u32 %s197_s13, 4  ;;  %s926_s15 = sshll.u32 %s1108_s21, 8 }
  0x20   : > { %s1218_s18 = scalar_lea.hbm %s1429_s0, %s926_s15  ;;  %s201_s26 = scalar_lea.vmem [#allocation2], %s906_s14 }
  0x21   : > { %s208_s27 = sshll.u32 %s201_s26, 4  ;;  %p1222_p7 = pnand %p944_p9, %p35_p10  ;;  %s1220_s27 = int_to_ptr.vmem [resolvable:$true] %s208_s27 }
  0x22   : > { %s1226_s30 = scalar_lea.sflag [#allocation3], %s197_s13  ;;  %s1042_s6 = scalar_lea.hbm %s1218_s18, 256 }
  0x23   : > { %p1043_p11 = scmp.ne.s32.totalorder %s1218_s18, %s1042_s6  ;;  %p1044_p12 = pneg %p1222_p7 }
  0x24   : > { %s1047_s9 = scalar_lea.hbm %s1429_s0, 512  ;;  %p1048_p2 = scmp.lt.s32.totalorder %s1218_s18, %s1429_s0 }
  0x25   : > { %p1045_p13 = pnand %p1044_p12, %p1043_p11  ;;  %p1049_p3 = scmp.lt.s32.totalorder %s1047_s9, %s1042_s6 }
  0x27   : > { %p1046_p0 = pneg %p1045_p13  ;;  %p1050_p6 = por %p1049_p3, %p1048_p2 }
  0x29   : > { %p1051_p8 = pnand %p1050_p6, %p1046_p0 }
  0x2b   : > { %1054 = shalt.err (!%p1051_p8)
}
  0x2c   : > { %s1055_s13 = scalar_lea.vmem %s1220_s27, 256  ;;  %s1113_s14 = smov [#allocation2]  }
  0x2d   : > { %p1056_p9 = scmp.ne.s32.totalorder %s1220_s27, %s1055_s13  ;;  %s1060_s15 = sshll.u32 %s1113_s14, 4  ;;  %s1061_s15 = int_to_ptr.vmem [resolvable:$false] %s1060_s15 }
  0x2e   : > { %s1062_s16 = scalar_lea.vmem %s1061_s15, 512  ;;  %p1063_p13 = scmp.lt.s32.totalorder %s1220_s27, %s1061_s15 }
  0x2f   : > { %p1058_p10 = pnand %p1056_p9, %p1044_p12  ;;  %p1064_p1 = scmp.lt.s32.totalorder %s1062_s16, %s1055_s13 }
  0x31   : > { %p1059_p11 = pneg %p1058_p10  ;;  %p1065_p4 = por %p1064_p1, %p1063_p13 }
  0x33   : > { %p1066_p5 = pnand %p1065_p4, %p1059_p11 }
  0x35   : > { %1069 = shalt.err (!%p1066_p5)
}
  0x36   : > { %s1114_s17 = smov 128   ;;  %s1115_s26 = smov 8  }
  0x37   : > { %942 = dma.hbm_to_vmem [thread:$0]  (!%p1222_p7), %s1218_s18, 256, %s1220_s27, %s1226_s30, %s1114_s17, %s1114_s17, %s1115_s26  }
  0x38   : > { %p1444_p12 = scmp.ne.s32.totalorder %s1441_s25, 0 }
  0x39   : > { %s232_s6 = sand.u32 (!%p1444_p12), 1, %s1100_s19   ;;  %p1445_p1 = scmp.ne.s32.totalorder (!%p1444_p12), %s1440_s24, 0 }
  0x3a   : > { %230 = sbr.rel (%p1444_p12) target bundleno = 401 (0x191), region = 40  ;;  %s1250_s7 = sshll.u32 (!%p1444_p12), %s232_s6, 4 }
  0x3b   : > { %s233_s8 = scalar_lea.sflag (!%p1444_p12), [#allocation3], %s232_s6  ;;  %s236_s9 = scalar_lea.vmem (!%p1444_p12), [#allocation2], %s1250_s7 }
  0x3f   : > { %1087 = dma.done.wait (%p1445_p1), %s233_s8, 256  }
  0x40   : > { %1089 = vsyncadd (%p1445_p1), %s233_s8, 4294967040  ;;  %p1446_p4 = scmp.ne.s32.totalorder %s1439_s23, 0 }
  0x42   : > { %1091 = dma.done.wait (%p1446_p4), [#allocation5], 8192  }
  0x43   : > { %1093 = vsyncadd (%p1446_p4), [#allocation5], 4294959104  ;;  %v1116_v0 = vmov 0.0   ;;  %v394_v1 = vld [vmem:[#allocation4 + $0x1f8] sm:$0xff]  ;;  %v393_v2 = vld [vmem:[#allocation4 + $0x1f0] sm:$0xff]  ;;  %s912_s23 = sshll.u32 %s901_s22, 1 }
  0x44   : > { %536 = vmatprep.mubr.f32.mxu1 %v1116_v0  ;;  %459 = vmatprep.mubr.f32.mxu0 %v1116_v0  ;;  %v390_v3 = vld [vmem:[#allocation4 + $0x1d8] sm:$0xff]  ;;  %v389_v4 = vld [vmem:[#allocation4 + $0x1d0] sm:$0xff]  ;;  %v392_v11 = vld [vmem:[#allocation4 + $0x1e8] sm:$0xff]  ;;  %p276_p5 = scmp.lt.s32.totalorder %s912_s23, 3  ;;  %vm549_vm0 = vcmask 523264  }
  0x45   : > { %472 = vmatprep.subr.mxu1 %v394_v1  ;;  %v386_v5 = vld [vmem:[#allocation4 + $0x1b8] sm:$0xff]  ;;  %v385_v6 = vld [vmem:[#allocation4 + $0x1b0] sm:$0xff]  ;;  %395 = vmatprep.subr.mxu0 %v392_v11  ;;  %v391_v13 = vld [vmem:[#allocation4 + $0x1e0] sm:$0xff] }
  0x46   : > { %473 = vmatpush1.msra.mxu1 %v393_v2  ;;  %v382_v7 = vld [vmem:[#allocation4 + $0x198] sm:$0xff]  ;;  %v381_v8 = vld [vmem:[#allocation4 + $0x190] sm:$0xff]  ;;  %396 = vmatpush1.msra.mxu0 %v391_v13  ;;  %v388_v15 = vld [vmem:[#allocation4 + $0x1c8] sm:$0xff]  ;;  %s1452_s23 = smov (!%p276_p5, %s912_s23), 3 }
  0x47   : > { %474 = vmatprep.subr.mxu1 %v390_v3  ;;  %v378_v9 = vld [vmem:[#allocation4 + $0x178] sm:$0xff]  ;;  %v377_v10 = vld [vmem:[#allocation4 + $0x170] sm:$0xff]  ;;  %v387_v16 = vld [vmem:[#allocation4 + $0x1c0] sm:$0xff]  ;;  %397 = vmatprep.subr.mxu0 %v388_v15  ;;  %s927_s21 = sshll.u32 %s1452_s23, 5 }
  0x48   : > { %475 = vmatpush1.msra.mxu1 %v389_v4  ;;  %v374_v12 = vld [vmem:[#allocation4 + $0x158] sm:$0xff]  ;;  %v373_v14 = vld [vmem:[#allocation4 + $0x150] sm:$0xff]  ;;  %v384_v18 = vld [vmem:[#allocation4 + $0x1a8] sm:$0xff]  ;;  %398 = vmatpush1.msra.mxu0 %v387_v16  ;;  %s1274_s25 = scalar_lea.vmem %s1430_s1, %s927_s21  ;;  %s1401_s28 = scalar_lea.vmem %s1434_s5, %s927_s21 }
  0x49   : > { %476 = vmatprep.subr.mxu1 %v386_v5  ;;  %v370_v17 = vld [vmem:[#allocation4 + $0x138] sm:$0xff]  ;;  %v369_v19 = vld [vmem:[#allocation4 + $0x130] sm:$0xff]  ;;  %v383_v20 = vld [vmem:[#allocation4 + $0x1a0] sm:$0xff]  ;;  %399 = vmatprep.subr.mxu0 %v384_v18 }
  0x4a   : > { %477 = vmatpush1.msra.mxu1 %v385_v6  ;;  %v380_v21 = vld [vmem:[#allocation4 + $0x188] sm:$0xff]  ;;  %v366_v22 = vld [vmem:[#allocation4 + $0x118] sm:$0xff]  ;;  %v379_v23 = vld [vmem:[#allocation4 + $0x180] sm:$0xff]  ;;  %400 = vmatpush1.msra.mxu0 %v383_v20 }
  0x4b   : > { %478 = vmatprep.subr.mxu1 %v382_v7  ;;  %v365_v24 = vld [vmem:[#allocation4 + $0x110] sm:$0xff]  ;;  %v376_v25 = vld [vmem:[#allocation4 + $0x168] sm:$0xff]  ;;  %v362_v26 = vld [vmem:[#allocation4 + $0xf8] sm:$0xff]  ;;  %401 = vmatprep.subr.mxu0 %v380_v21 }
  0x4c   : > { %479 = vmatpush1.msra.mxu1 %v381_v8  ;;  %v375_v27 = vld [vmem:[#allocation4 + $0x160] sm:$0xff]  ;;  %v361_v28 = vld [vmem:[#allocation4 + $0xf0] sm:$0xff]  ;;  %402 = vmatpush1.msra.mxu0 %v379_v23  ;;  %v372_v29 = vld [vmem:[#allocation4 + $0x148] sm:$0xff] }
  0x4d   : > { %480 = vmatprep.subr.mxu1 %v378_v9  ;;  %v358_v30 = vld [vmem:[#allocation4 + $0xd8] sm:$0xff]  ;;  %403 = vmatprep.subr.mxu0 %v376_v25  ;;  %v371_v31 = vld [vmem:[#allocation4 + $0x140] sm:$0xff]  ;;  %v357_v32 = vld [vmem:[#allocation4 + $0xd0] sm:$0xff] }
  0x4e   : > { %481 = vmatpush1.msra.mxu1 %v377_v10  ;;  %404 = vmatpush1.msra.mxu0 %v375_v27  ;;  %v368_v33 = vld [vmem:[#allocation4 + $0x128] sm:$0xff]  ;;  %v354_v34 = vld [vmem:[#allocation4 + $0xb8] sm:$0xff]  ;;  %v367_v35 = vld [vmem:[#allocation4 + $0x120] sm:$0xff] }
  0x4f   : > { %482 = vmatprep.subr.mxu1 %v374_v12  ;;  %405 = vmatprep.subr.mxu0 %v372_v29  ;;  %v353_v36 = vld [vmem:[#allocation4 + $0xb0] sm:$0xff]  ;;  %v364_v37 = vld [vmem:[#allocation4 + $0x108] sm:$0xff]  ;;  %v350_v38 = vld [vmem:[#allocation4 + $0x98] sm:$0xff] }
  0x50   : > { %483 = vmatpush1.msra.mxu1 %v373_v14  ;;  %406 = vmatpush1.msra.mxu0 %v371_v31  ;;  %v363_v39 = vld [vmem:[#allocation4 + $0x100] sm:$0xff]  ;;  %v349_v40 = vld [vmem:[#allocation4 + $0x90] sm:$0xff]  ;;  %v360_v41 = vld [vmem:[#allocation4 + $0xe8] sm:$0xff] }
  0x51   : > { %484 = vmatprep.subr.mxu1 %v370_v17  ;;  %407 = vmatprep.subr.mxu0 %v368_v33  ;;  %v346_v42 = vld [vmem:[#allocation4 + $0x78] sm:$0xff]  ;;  %v359_v43 = vld [vmem:[#allocation4 + $0xe0] sm:$0xff]  ;;  %v345_v44 = vld [vmem:[#allocation4 + $0x70] sm:$0xff] }
  0x52   : > { %485 = vmatpush1.msra.mxu1 %v369_v19  ;;  %408 = vmatpush1.msra.mxu0 %v367_v35  ;;  %v356_v45 = vld [vmem:[#allocation4 + $0xc8] sm:$0xff]  ;;  %v342_v46 = vld [vmem:[#allocation4 + $0x58] sm:$0xff]  ;;  %v355_v47 = vld [vmem:[#allocation4 + $0xc0] sm:$0xff] }
  0x53   : > { %486 = vmatprep.subr.mxu1 %v366_v22  ;;  %409 = vmatprep.subr.mxu0 %v364_v37  ;;  %v341_v48 = vld [vmem:[#allocation4 + $0x50] sm:$0xff]  ;;  %v352_v49 = vld [vmem:[#allocation4 + $0xa8] sm:$0xff]  ;;  %v338_v50 = vld [vmem:[#allocation4 + $0x38] sm:$0xff] }
  0x54   : > { %487 = vmatpush1.msra.mxu1 %v365_v24  ;;  %410 = vmatpush1.msra.mxu0 %v363_v39  ;;  %v351_v51 = vld [vmem:[#allocation4 + $0xa0] sm:$0xff]  ;;  %v337_v52 = vld [vmem:[#allocation4 + $0x30] sm:$0xff]  ;;  %v348_v53 = vld [vmem:[#allocation4 + $0x88] sm:$0xff] }
  0x55   : > { %488 = vmatprep.subr.mxu1 %v362_v26  ;;  %411 = vmatprep.subr.mxu0 %v360_v41  ;;  %v334_v54 = vld [vmem:[#allocation4 + $0x18] sm:$0xff]  ;;  %v347_v55 = vld [vmem:[#allocation4 + $0x80] sm:$0xff]  ;;  %v333_v56 = vld [vmem:[#allocation4 + $0x10] sm:$0xff] }
  0x56   : > { %489 = vmatpush1.msra.mxu1 %v361_v28  ;;  %412 = vmatpush1.msra.mxu0 %v359_v43  ;;  %v344_v57 = vld [vmem:[#allocation4 + $0x68] sm:$0xff]  ;;  %v289_v58 = vld [vmem:[%s1274_s25] sm:$0xff]  ;;  %v330_v59 = vld [vmem:[%s1431_s2 + $0xf8] sm:$0xff] }
  0x57   : > { %490 = vmatprep.subr.mxu1 %v358_v30  ;;  %413 = vmatprep.subr.mxu0 %v356_v45  ;;  %v329_v60 = vld [vmem:[%s1431_s2 + $0xf0] sm:$0xff]  ;;  %v326_v61 = vld [vmem:[%s1431_s2 + $0xd8] sm:$0xff]  ;;  %v343_v62 = vld [vmem:[#allocation4 + $0x60] sm:$0xff] }
  0x58   : > { %491 = vmatpush1.msra.mxu1 %v357_v32  ;;  %414 = vmatpush1.msra.mxu0 %v355_v47  ;;  %v325_v63 = vld [vmem:[%s1431_s2 + $0xd0] sm:$0xff]  ;;  %v340_v1 = vld [vmem:[#allocation4 + $0x48] sm:$0xff]  ;;  %v322_v2 = vld [vmem:[%s1431_s2 + $0xb8] sm:$0xff] }
  0x59   : > { %492 = vmatprep.subr.mxu1 %v354_v34  ;;  %415 = vmatprep.subr.mxu0 %v352_v49  ;;  %v1294_v3 = vld [vmem:[%s1274_s25 + $0x20] sm:$0xff]  ;;  %v321_v4 = vld [vmem:[%s1431_s2 + $0xb0] sm:$0xff]  ;;  %v318_v5 = vld [vmem:[%s1431_s2 + $0x98] sm:$0xff] }
  0x5a   : > { %493 = vmatpush1.msra.mxu1 %v353_v36  ;;  %416 = vmatpush1.msra.mxu0 %v351_v51  ;;  %v339_v6 = vld [vmem:[#allocation4 + $0x40] sm:$0xff]  ;;  %v317_v7 = vld [vmem:[%s1431_s2 + $0x90] sm:$0xff]  ;;  %v336_v8 = vld [vmem:[#allocation4 + $0x28] sm:$0xff] }
  0x5b   : > { %494 = vmatprep.subr.mxu1 %v350_v38  ;;  %417 = vmatprep.subr.mxu0 %v348_v53  ;;  %v314_v9 = vld [vmem:[%s1431_s2 + $0x78] sm:$0xff]  ;;  %v335_v10 = vld [vmem:[#allocation4 + $0x20] sm:$0xff]  ;;  %v313_v11 = vld [vmem:[%s1431_s2 + $0x70] sm:$0xff]  ;;  %v712_v38 = vlaneseq }
  0x5c   : > { %495 = vmatpush1.msra.mxu1 %v349_v40  ;;  %418 = vmatpush1.msra.mxu0 %v347_v55  ;;  %v332_v12 = vld [vmem:[#allocation4 + $0x8] sm:$0xff]  ;;  %v310_v13 = vld [vmem:[%s1431_s2 + $0x58] sm:$0xff]  ;;  %v331_v14 = vld [vmem:[#allocation4] sm:$0xff] }
  0x5d   : > { %496 = vmatprep.subr.mxu1 %v346_v42  ;;  %419 = vmatprep.subr.mxu0 %v344_v57  ;;  %v309_v15 = vld [vmem:[%s1431_s2 + $0x50] sm:$0xff]  ;;  %v328_v16 = vld [vmem:[%s1431_s2 + $0xe8] sm:$0xff]  ;;  %v306_v17 = vld [vmem:[%s1431_s2 + $0x38] sm:$0xff]  ;;  %v713_v40 = vshrl.u32 %v712_v38, 7 }
  0x5e   : > { %497 = vmatpush1.msra.mxu1 %v345_v44  ;;  %420 = vmatpush1.msra.mxu0 %v343_v62  ;;  %v305_v18 = vld [vmem:[%s1431_s2 + $0x30] sm:$0xff]  ;;  %v327_v19 = vld [vmem:[%s1431_s2 + $0xe0] sm:$0xff]  ;;  %v302_v20 = vld [vmem:[%s1431_s2 + $0x18] sm:$0xff] }
  0x5f   : > { %498 = vmatprep.subr.mxu1 %v342_v46  ;;  %421 = vmatprep.subr.mxu0 %v340_v1  ;;  %v324_v21 = vld [vmem:[%s1431_s2 + $0xc8] sm:$0xff]  ;;  %v301_v22 = vld [vmem:[%s1431_s2 + $0x10] sm:$0xff]  ;;  %v323_v23 = vld [vmem:[%s1431_s2 + $0xc0] sm:$0xff]  ;;  %v722_v43 = vsub.s32 2, %v713_v40 }
  0x60   : > { %499 = vmatpush1.msra.mxu1 %v341_v48  ;;  %422 = vmatpush1.msra.mxu0 %v339_v6  ;;  %v297_v24 = vld [vmem:[%s236_s9] sm:$0xff]  ;;  %v320_v25 = vld [vmem:[%s1431_s2 + $0xa8] sm:$0xff] }
  0x61   : > { %500 = vmatprep.subr.mxu1 %v338_v50  ;;  %423 = vmatprep.subr.mxu0 %v336_v8  ;;  %v319_v26 = vld [vmem:[%s1431_s2 + $0xa0] sm:$0xff]  ;;  %v316_v27 = vld [vmem:[%s1431_s2 + $0x88] sm:$0xff] }
  0x62   : > { %501 = vmatpush1.msra.mxu1 %v337_v52  ;;  %424 = vmatpush1.msra.mxu0 %v335_v10  ;;  %v315_v28 = vld [vmem:[%s1431_s2 + $0x80] sm:$0xff]  ;;  %v298_v29 = vld [vmem:[%s236_s9 + $0x8] sm:$0xff] }
  0x63   : > { %502 = vmatprep.subr.mxu1 %v334_v54  ;;  %425 = vmatprep.subr.mxu0 %v332_v12  ;;  %v312_v30 = vld [vmem:[%s1431_s2 + $0x68] sm:$0xff]  ;;  %v311_v31 = vld [vmem:[%s1431_s2 + $0x60] sm:$0xff] }
  0x64   : > { %503 = vmatpush1.msra.mxu1 %v333_v56  ;;  %426 = vmatpush1.msra.mxu0 %v331_v14  ;;  %v308_v32 = vld [vmem:[%s1431_s2 + $0x48] sm:$0xff]  ;;  %v307_v33 = vld [vmem:[%s1431_s2 + $0x40] sm:$0xff] }
  0x65   : > { %537 = vmatmul.mubr.f32.vlgmr.msra.gmra.mxu1 %v289_v58  ;;  %649 = vmatprep.subr.mxu1 %v330_v59  ;;  %v304_v34 = vld [vmem:[%s1431_s2 + $0x28] sm:$0xff]  ;;  %v303_v35 = vld [vmem:[%s1431_s2 + $0x20] sm:$0xff] }
  0x66   : > { %650 = vmatpush1.msra.mxu1 %v329_v60  ;;  %542 = vmatprep.mubr.f32.mxu1 %v1116_v0  ;;  %v300_v36 = vld [vmem:[%s1431_s2 + $0x8] sm:$0xff]  ;;  %v299_v37 = vld [vmem:[%s1431_s2] sm:$0xff] }
  0x67   : > { %651 = vmatprep.subr.mxu1 %v326_v61  ;;  %572 = vmatprep.subr.mxu0 %v328_v16  ;;  %v710_v44 = vld [vmem:[%s1433_s4] sm:$0xf] }
  0x68   : > { %652 = vmatpush1.msra.mxu1 %v325_v63  ;;  %460 = vmatmul.mubr.f32.vlgmr.msra.gmra.mxu0 %v289_v58  ;;  %v723_v46 = vrot.slane %v710_v44, %v722_v43 }
  0x69   : > { %653 = vmatprep.subr.mxu1 %v322_v2  ;;  %543 = vmatmul.mubr.f32.gmra.mxu1 %v1294_v3 }
  0x6a   : > { %654 = vmatpush1.msra.mxu1 %v321_v4  ;;  %697 = vmatprep.mubr.f32.mxu1 %v1116_v0 }
  0x6b   : > { %655 = vmatprep.subr.mxu1 %v318_v5  ;;  %573 = vmatpush1.msra.mxu0 %v327_v19  ;;  %v726_v5 = vsub.s32 3, %v713_v40 }
  0x6c   : > { %656 = vmatpush1.msra.mxu1 %v317_v7  ;;  %574 = vmatprep.subr.mxu0 %v324_v21  ;;  %v718_v7 = vsub.s32 1, %v713_v40 }
  0x6d   : > { %657 = vmatprep.subr.mxu1 %v314_v9  ;;  %575 = vmatpush1.msra.mxu0 %v323_v23  ;;  %v727_v10 = vrot.slane %v710_v44, %v726_v5 }
  0x6e   : > { %658 = vmatpush1.msra.mxu1 %v313_v11  ;;  %576 = vmatprep.subr.mxu0 %v320_v25  ;;  %v714_v11 = vsub.s32 0, %v713_v40 }
  0x6f   : > { %659 = vmatprep.subr.mxu1 %v310_v13  ;;  %577 = vmatpush1.msra.mxu0 %v319_v26 }
  0x70   : > { %660 = vmatpush1.msra.mxu1 %v309_v15  ;;  %578 = vmatprep.subr.mxu0 %v316_v27 }
  0x71   : > { %661 = vmatprep.subr.mxu1 %v306_v17  ;;  %465 = vmatprep.mubr.f32.mxu0 %v1116_v0  ;;  %v719_v17 = vrot.slane %v710_v44, %v718_v7 }
  0x72   : > { %662 = vmatpush1.msra.mxu1 %v305_v18  ;;  %579 = vmatpush1.msra.mxu0 %v315_v28 }
  0x73   : > { %663 = vmatprep.subr.mxu1 %v302_v20  ;;  %580 = vmatprep.subr.mxu0 %v312_v30  ;;  %v295_v20 = vld [vmem:[%s1274_s25 + $0x18] sm:$0xff] }
  0x74   : > { %664 = vmatpush1.msra.mxu1 %v301_v22  ;;  %581 = vmatpush1.msra.mxu0 %v311_v31 }
  0x75   : > { %920 = vmatmul.mubr.msk.f32.vlgmr.msra.gmra.mxu1 %vm549_vm0, %v297_v24  ;;  %582 = vmatprep.subr.mxu0 %v308_v32 }
  0x76   : > { %703 = vmatprep.mubr.f32.mxu1 %v1116_v0  ;;  %466 = vmatmul.mubr.f32.gmra.mxu0 %v1294_v3 }
  0x77   : > { %583 = vmatpush1.msra.mxu0 %v307_v33  ;;  %620 = vmatprep.mubr.f32.mxu0 %v1116_v0  ;;  %v296_v33 = vld [vmem:[%s1274_s25 + $0x38] sm:$0xff] }
  0x78   : > { %584 = vmatprep.subr.mxu0 %v304_v34 }
  0x79   : > { %921 = vmatmul.mubr.msk.f32.gmra.mxu1 %vm549_vm0, %v298_v29  ;;  %585 = vmatpush1.msra.mxu0 %v303_v35 }
  0x7a   : > { %586 = vmatprep.subr.mxu0 %v300_v36 }
  0x7b   : > { %587 = vmatpush1.msra.mxu0 %v299_v37 }
  0x7c   : > { %918 = vmatmul.mubr.msk.f32.vlgmr.msra.gmra.mxu0 %vm549_vm0, %v297_v24  ;;  %v715_v24 = vrot.slane %v710_v44, %v714_v11 }
  0x7d   : > { %626 = vmatprep.mubr.f32.mxu0 %v1116_v0 }
  0x80   : > { %919 = vmatmul.mubr.msk.f32.gmra.mxu0 %vm549_vm0, %v298_v29 }
 0x125   : > { %v538_v39 = vpop.f32.mrf.mxu1 }
 0x127   : > { %v540_v41 = vpop.f32.mrf.mxu1 }
 0x128   : > { %v461_v59 = vpop.f32.mrf.mxu0 }
 0x129   : > { %v544_v42 = vpop.f32.mrf.mxu1 }
 0x12a   : > { %v463_v60 = vpop.f32.mrf.mxu0 }
 0x12b   : > { %v546_v45 = vpop.f32.mrf.mxu1 }
 0x135   : > { %v699_v47 = vpop.f32.mrf.mxu1 }
 0x136   : > { %v700_v48 = vadd.f32 %v699_v47, %v538_v39  ;;  %v467_v61 = vpop.f32.mrf.mxu0 }
 0x137   : > { %v701_v49 = vpop.f32.mrf.mxu1 }
 0x138   : > { %v734_v50 = vadd.f32 %v723_v46, %v700_v48  ;;  %v469_v1 = vpop.f32.mrf.mxu0  ;;  %v702_v9 = vadd.f32 %v701_v49, %v540_v41 }
 0x139   : > { %v705_v51 = vpop.f32.mrf.mxu1 }
 0x13a   : > { %v756_v0 = vand.u32 2147483647, %v734_v50  ;;  %v706_v52 = vadd.f32 %v705_v51, %v544_v42  ;;  %v754_v14 = vmin.f32 %v734_v50, 0.0  ;;  %v735_v19 = vadd.f32 %v727_v10, %v702_v9 }
 0x13b   : > { %v707_v13 = vpop.f32.mrf.mxu1 }
 0x13c   : > { %v758_v53 = vsub.f32 0.0, %v756_v0  ;;  %v738_v54 = vadd.f32 %v723_v46, %v706_v52  ;;  %v622_v4 = vpop.f32.mrf.mxu0  ;;  %v708_v22 = vadd.f32 %v707_v13, %v546_v45  ;;  %v922_v32 = vmul.f32 -1.442695, %v735_v19 }
 0x13d   : > { %v623_v23 = vadd.f32 %v622_v4, %v461_v59 }
 0x13e   : > { %v760_v55 = vmul.f32 1.442695, %v758_v53  ;;  %v757_v56 = vand.u32 2147483647, %v738_v54  ;;  %v624_v6 = vpop.f32.mrf.mxu0  ;;  %v755_v26 = vmin.f32 %v738_v54, 0.0  ;;  %v739_v35 = vadd.f32 %v727_v10, %v708_v22 }
 0x13f   : > { %v625_v16 = vadd.f32 %v624_v6, %v463_v60  ;;  %v732_v36 = vadd.f32 %v715_v24, %v623_v23 }
 0x140   : > { %984 = vpow2.f32 %v760_v55  ;;  %v759_v57 = vsub.f32 0.0, %v757_v56  ;;  %v628_v8 = vpop.f32.mrf.mxu0  ;;  %v923_v43 = vmul.f32 -1.442695, %v739_v35 }
 0x141   : > { %v733_v30 = vadd.f32 %v719_v17, %v625_v16  ;;  %v629_v38 = vadd.f32 %v628_v8, %v467_v61 }
 0x142   : > { %v762_v58 = vmul.f32 1.442695, %v759_v57  ;;  %v630_v18 = vpop.f32.mrf.mxu0 }
 0x143   : > { %v631_v27 = vadd.f32 %v630_v18, %v469_v1  ;;  %v736_v46 = vadd.f32 %v715_v24, %v629_v38 }
 0x144   : > { %986 = vpow2.f32 %v762_v58 }
 0x145   : > { %v737_v39 = vadd.f32 %v719_v17, %v631_v27 }
 0x14d   : > { %v985_v62 = vpop.eup %984 }
 0x14e   : > { %v764_v63 = vadd.f32 1.0, %v985_v62 }
 0x150   : > { %988 = vlog2.f32 %v764_v63 }
 0x151   : > { %v987_v2 = vpop.eup %986 }
 0x152   : > { %v765_v3 = vadd.f32 1.0, %v987_v2 }
 0x154   : > { %990 = vlog2.f32 %v765_v3 }
 0x15d   : > { %v989_v12 = vpop.eup %988 }
 0x15e   : > { %v767_v15 = vmul.f32 0.6931472, %v989_v12 }
 0x160   : > { %v770_v21 = vsub.f32 %v754_v14, %v767_v15 }
 0x161   : > { %v991_v25 = vpop.eup %990 }
 0x162   : > { %v772_v28 = vmul.f32 1.442695, %v770_v21  ;;  %v769_v29 = vmul.f32 0.6931472, %v991_v25  ;;  %v776_v31 = vadd.f32 %v770_v21, %v295_v20 }
 0x164   : > { %v771_v34 = vsub.f32 %v755_v26, %v769_v29  ;;  %v778_v37 = vmax.f32 %v776_v31, %v733_v30  ;;  %992 = vpow2.f32 %v772_v28 }
 0x165   : > { %994 = vpow2.f32 %v922_v32 }
 0x166   : > { %v774_v40 = vmul.f32 1.442695, %v771_v34  ;;  %v780_v41 = vsub.f32 %v733_v30, %v778_v37  ;;  %v777_v42 = vadd.f32 %v771_v34, %v296_v33  ;;  %808 = vst [vmem:[%s1401_s28 + $0x18] sm:$0xff] %v778_v37  ;;  %996 = vtanh.f32 %v732_v36 }
 0x168   : > { %v782_v44 = vmul.f32 1.442695, %v780_v41  ;;  %v779_v45 = vmax.f32 %v777_v42, %v737_v39  ;;  %998 = vpow2.f32 %v774_v40 }
 0x16a   : > { %1000 = vpow2.f32 %v782_v44  ;;  %v781_v47 = vsub.f32 %v737_v39, %v779_v45  ;;  %809 = vst [vmem:[%s1401_s28 + $0x38] sm:$0xff] %v779_v45 }
 0x16b   : > { %1002 = vpow2.f32 %v923_v43 }
 0x16c   : > { %v784_v48 = vmul.f32 1.442695, %v781_v47  ;;  %1004 = vtanh.f32 %v736_v46 }
 0x16e   : > { %1006 = vpow2.f32 %v784_v48 }
 0x171   : > { %v993_v49 = vpop.eup %992  ;;  %v293_v50 = vld [vmem:[%s1274_s25 + $0x10] sm:$0xff]  ;;  %v291_v52 = vld [vmem:[%s1274_s25 + $0x8] sm:$0xff] }
 0x172   : > { %v995_v51 = vpop.eup %994  ;;  %v792_v54 = vmul.f32 %v993_v49, %v293_v50  ;;  %v294_v57 = vld [vmem:[%s1274_s25 + $0x30] sm:$0xff]  ;;  %v786_v58 = vmul.f32 %v993_v49, %v291_v52  ;;  %v292_v62 = vld [vmem:[%s1274_s25 + $0x28] sm:$0xff] }
 0x173   : > { %v997_v0 = vpop.eup %996  ;;  %v748_v56 = vadd.f32 1.0, %v995_v51 }
 0x175   : > { %v999_v53 = vpop.eup %998 }
 0x176   : > { %v793_v2 = vmul.f32 %v999_v53, %v294_v57  ;;  %v787_v4 = vmul.f32 %v999_v53, %v292_v62 }
 0x177   : > { %v1001_v55 = vpop.eup %1000 }
 0x178   : > { %v788_v59 = vmul.f32 %v1001_v55, %v997_v0  ;;  %v794_v60 = vadd.f32 %v1001_v55, %v792_v54  ;;  %v1003_v61 = vpop.eup %1002 }
 0x179   : > { %v1005_v63 = vpop.eup %1004  ;;  %v749_v5 = vadd.f32 1.0, %v1003_v61 }
 0x17a   : > { %v790_v1 = vadd.f32 %v788_v59, %v786_v58  ;;  %1008 = vrcp.f32 %v794_v60  ;;  %806 = vst [vmem:[%s1401_s28 + $0x10] sm:$0xff] %v794_v60 }
 0x17b   : > { %v1007_v3 = vpop.eup %1006  ;;  %1010 = vrcp.f32 %v748_v56 }
 0x17c   : > { %804 = vst [vmem:[%s1401_s28 + $0x8] sm:$0xff] %v790_v1  ;;  %v789_v6 = vmul.f32 %v1007_v3, %v1005_v63  ;;  %v795_v7 = vadd.f32 %v1007_v3, %v793_v2 }
 0x17e   : > { %v791_v8 = vadd.f32 %v789_v6, %v787_v4  ;;  %1012 = vrcp.f32 %v795_v7  ;;  %807 = vst [vmem:[%s1401_s28 + $0x30] sm:$0xff] %v795_v7 }
 0x17f   : > { %1014 = vrcp.f32 %v749_v5 }
 0x180   : > { %805 = vst [vmem:[%s1401_s28 + $0x28] sm:$0xff] %v791_v8 }
 0x187   : > { %v1009_v9 = vpop.eup %1008 }
 0x188   : > { %v1011_v10 = vpop.eup %1010  ;;  %v797_v11 = vmul.f32 %v1009_v9, %v790_v1 }
 0x18a   : > { %v800_v12 = vmul.f32 %v1011_v10, %v797_v11 }
 0x18b   : > { %v1013_v13 = vpop.eup %1012 }
 0x18c   : > { %802 = vst [vmem:[%s1401_s28] sm:$0xff] %v800_v12  ;;  %v799_v14 = vmul.f32 %v1013_v13, %v791_v8  ;;  %v1015_v15 = vpop.eup %1014 }
 0x18e   : > { %v801_v16 = vmul.f32 %v1015_v15, %v799_v14 }
 0x190   : > { %803 = vst [vmem:[%s1401_s28 + $0x20] sm:$0xff] %v801_v16 }
 0x191 PF: > { %p16_p7 = scmp.ge.s32.totalorder %s1194_s29, 4   ;;  %s1447_s18 = smov %s1100_s19 }
 0x192   : > { %s1448_s19 = smov %s1104_s20  ;;  %s1449_s20 = smov %s1211_s12 }
 0x193   : > { %s1450_s21 = smov %s1194_s29  ;;  %18 = sbr.rel (!%p16_p7) target bundleno = 4 (0x4), region = 87 }
 0x198   :  { %834 = vsyncpa [#allocation3], 1 }
 0x199   :  { %836 = vsyncpa [#allocation3 + $0x1], 1 }
 0x19a   :  { %837 = vsyncpa [#allocation5], 1 }

</bundles_post_ra>
